<compile_context>
chip_gen: v7x
topology: tpu7x:2x2x1
jax: 0.10.0
libtpu: 0.0.40
codegen_flags: <defaults>
</compile_context>

<pallas_src>
import jax
import jax.numpy as jnp
from jax.experimental import pallas as pl
from jax.experimental.pallas import tpu as pltpu


def pooler_kernel(x_ref, w_ref, b_ref, o_ref):
    # x_ref: (B_pad, H)      -- first-token rows, resident across the grid
    # w_ref: (TN, H)         -- strip of nn.Linear weight rows (out-feature tile)
    # b_ref: (1, H_out_pad)  -- full bias, resident; strip sliced in-kernel
    # o_ref: (B_pad, TN)
    tn = o_ref.shape[1]

    x = x_ref[...]
    w = w_ref[...]
    if x.dtype != w.dtype:
        # bf16 weight-streaming path: feed the MXU bf16 x bf16, accumulate f32.
        x = x.astype(w.dtype)

    # Contract last dims of both operands (x @ W.T) -> MXU, no transpose.
    y = jax.lax.dot_general(
        x, w,
        dimension_numbers=(((1,), (1,)), ((), ())),
        preferred_element_type=jnp.float32)

    start = pl.multiple_of(pl.program_id(0) * tn, tn)
    y = y + b_ref[:, pl.ds(start, tn)].astype(jnp.float32)
    o_ref[...] = jnp.tanh(y).astype(o_ref.dtype)


def _round_up(x, m):
    return ((x + m - 1) // m) * m


def _vmem_capacity_bytes():
    """Physical VMEM of the current part (v7x: 64 MiB/TC, v5e/v6e: 128 MiB)."""
    try:
        info = pltpu.get_tpu_info()
        cap = getattr(info, "vmem_capacity_bytes", None)
        if cap:
            return int(cap)
    except Exception:
        pass
    return 64 << 20  # conservative default (v7x per-TC)


def _choose_tn(H, w_itemsize, strip_budget_bytes):
    """Lane-dense (multiple-of-128) output strip width.

    Targets ~8+ grid steps so BlockSpec double-buffering has a steady state
    (and both v7x TensorCores get work), while the double-buffered weight
    strip stays under the per-part VMEM budget.
    """
    tn = max(128, min(512, (H // 8) // 128 * 128))
    while tn > 128 and 2 * tn * H * w_itemsize > strip_budget_bytes:
        tn -= 128
    return tn


def pooler(hidden_states, weight, bias, *, weight_dtype=None):
    """hidden_states: [B, S, H]; weight: [H, H] (nn.Linear layout); bias: [H] -> [B, H].

    weight_dtype: optional streaming dtype for the weight (e.g. jnp.bfloat16)
    to halve HBM traffic; None keeps exact input-precision numerics.
    """
    B, S, H = hidden_states.shape
    out_dtype = hidden_states.dtype

    # First-token slice in the wrapper (tiny next to the weight stream).
    first = hidden_states[:, 0]                          # (B, H)

    # Optional bf16 weight streaming (the kernel is pure HBM roofline on W).
    w = weight if weight_dtype is None else weight.astype(weight_dtype)
    w_itemsize = jnp.dtype(w.dtype).itemsize

    # Pad batch rows to the packed sublane multiple of the output dtype
    # (8 for f32, 16 for bf16, 32 for int8) so stores are unmasked.
    sublane = max(8, 32 // jnp.dtype(out_dtype).itemsize)
    B_pad = max(_round_up(B, sublane), sublane)
    if B_pad != B:
        first = jnp.pad(first, ((0, B_pad - B), (0, 0)))

    # VMEM policy derived from the actual part.
    vmem_cap = _vmem_capacity_bytes()
    strip_budget = (12 << 20) if vmem_cap <= (64 << 20) else (28 << 20)

    TN = _choose_tn(H, w_itemsize, strip_budget)
    H_out = _round_up(H, TN)                              # padded out-features
    grid = (H_out // TN,)

    # Pad out-feature rows of W and the bias with zeros; padded columns are
    # sliced off the output, so numerics are unchanged.
    if H_out != H:
        w = jnp.pad(w, ((0, H_out - H), (0, 0)))
        bias_p = jnp.pad(bias, (0, H_out - H))
    else:
        bias_p = bias
    bias2d = bias_p.reshape(1, H_out).astype(jnp.float32)

    # VMEM plan: resident x + bias, double-buffered weight strip + output tile,
    # plus a few MiB of headroom — well inside v7x's 64 MiB.
    x_itemsize = jnp.dtype(first.dtype).itemsize
    est = (B_pad * H * x_itemsize
           + H_out * 4
           + 2 * TN * H * w_itemsize
           + 2 * B_pad * TN * jnp.dtype(out_dtype).itemsize)
    vmem_limit = int(min(max(est + (4 << 20), 8 << 20),
                         max(vmem_cap - (8 << 20), 16 << 20)))

    out = pl.pallas_call(
        pooler_kernel,
        out_shape=jax.ShapeDtypeStruct((B_pad, H_out), out_dtype),
        grid_spec=pltpu.PrefetchScalarGridSpec(
            num_scalar_prefetch=0,
            grid=grid,
            in_specs=[
                pl.BlockSpec((B_pad, H), lambda n: (0, 0)),   # activations (resident)
                pl.BlockSpec((TN, H), lambda n: (n, 0)),      # weight strip (streamed)
                pl.BlockSpec((1, H_out), lambda n: (0, 0)),   # bias (resident)
            ],
            out_specs=pl.BlockSpec((B_pad, TN), lambda n: (0, n)),
        ),
        compiler_params=pltpu.CompilerParams(
            dimension_semantics=("parallel",),   # megacore split over output strips
            vmem_limit_bytes=vmem_limit,
        ),
    )(first, w, bias2d)
    return out[:B, :H]


def pooler_ref(hidden_states, weight, bias):
    # Pure-JAX reference for correctness checking.
    first = hidden_states[:, 0]
    return jnp.tanh(first @ weight.T + bias)


if __name__ == "__main__":
    key = jax.random.PRNGKey(0)

    # --- Test 1: small shapes (batch=2, seq=8, model_dim=32), exact f32 path.
    B, S, H = 2, 8, 32
    k_x, k_w, k_b, key = *jax.random.split(key, 3), jax.random.split(key, 4)[3]
    hidden_states = jax.random.normal(k_x, (B, S, H), dtype=jnp.float32)
    weight = jax.random.normal(k_w, (H, H), dtype=jnp.float32) * 0.02
    bias = jax.random.normal(k_b, (H,), dtype=jnp.float32) * 0.02

    out = jax.block_until_ready(pooler(hidden_states, weight, bias))
    ref = pooler_ref(hidden_states, weight, bias)
    assert out.shape == (B, H)
    assert jnp.allclose(out, ref, atol=1e-5, rtol=1e-5), "mismatch vs reference (small)"

    # --- Test 2: multi-strip path (batch padding, several weight strips,
    # parallel grid axis), still small: batch=5, seq=4, model_dim=256.
    B2, S2, H2 = 5, 4, 256
    k_x2, k_w2, k_b2 = jax.random.split(key, 3)
    hs2 = jax.random.normal(k_x2, (B2, S2, H2), dtype=jnp.float32)
    w2 = jax.random.normal(k_w2, (H2, H2), dtype=jnp.float32) * 0.02
    b2 = jax.random.normal(k_b2, (H2,), dtype=jnp.float32) * 0.02

    out2 = jax.block_until_ready(pooler(hs2, w2, b2))
    ref2 = pooler_ref(hs2, w2, b2)
    assert out2.shape == (B2, H2)
    assert jnp.allclose(out2, ref2, atol=1e-5, rtol=1e-5), "mismatch vs reference (multi-strip)"

    # --- Test 3: bf16 weight-streaming path (perf mode), looser tolerance.
    out3 = jax.block_until_ready(pooler(hs2, w2, b2, weight_dtype=jnp.bfloat16))
    assert out3.shape == (B2, H2)
    assert jnp.allclose(out3, ref2, atol=2e-2, rtol=2e-2), "mismatch vs reference (bf16 weights)"

    print("KERNEL_OK")
</pallas_src>

<mosaic_0001>
module attributes {stable_mosaic.version = 11 : i64} {
  func.func @pooler_kernel(%arg0: i32, %arg1: memref<8x32xf32, #tpu.memory_space<vmem>>, %arg2: memref<128x32xf32, #tpu.memory_space<vmem>>, %arg3: memref<1x128xf32, #tpu.memory_space<vmem>>, %arg4: memref<8x128xf32, #tpu.memory_space<vmem>>) attributes {dimension_semantics = [#tpu.dimension_semantics<parallel>], iteration_bounds = array<i64: 1>, scalar_prefetch = 0 : i64, scratch_operands = 0 : i64, tpu.core_type = #tpu.core_type<tc>, window_params = [{pipeline_mode = #tpu.pipeline_mode<synchronous>, transform_indices = @transform_0, window_bounds = array<i64: 8, 32>}, {transform_indices = @transform_1, window_bounds = array<i64: 128, 32>}, {pipeline_mode = #tpu.pipeline_mode<synchronous>, transform_indices = @transform_2, window_bounds = array<i64: 1, 128>}, {transform_indices = @transform_3, window_bounds = array<i64: 8, 128>}]} {
    %c0 = arith.constant 0 : index
    %c0_0 = arith.constant 0 : index
    %0 = vector.load %arg1[%c0, %c0_0] : memref<8x32xf32, #tpu.memory_space<vmem>>, vector<8x32xf32>
    %c0_1 = arith.constant 0 : index
    %c0_2 = arith.constant 0 : index
    %1 = vector.load %arg2[%c0_1, %c0_2] : memref<128x32xf32, #tpu.memory_space<vmem>>, vector<128x32xf32>
    %cst = arith.constant dense<0.000000e+00> : vector<8x128xf32>
    %2 = tpu.matmul %0, %1, %cst {dimension_numbers = #tpu.dot_dimension_numbers<[1], [1], [0], [0], [0, 0, 1, 0], [], []>} : vector<8x32xf32>, vector<128x32xf32>, vector<8x128xf32> -> vector<8x128xf32>
    %c128_i32 = arith.constant 128 : i32
    %3 = arith.muli %arg0, %c128_i32 : i32
    %4 = tpu.assume_multiple %3, 128 : i32
    %c0_3 = arith.constant 0 : index
    %5 = arith.index_cast %4 : i32 to index
    %6 = vector.load %arg3[%c0_3, %5] : memref<1x128xf32, #tpu.memory_space<vmem>>, vector<1x128xf32>
    %7 = vector.broadcast %6 : vector<1x128xf32> to vector<8x128xf32>
    %8 = arith.addf %2, %7 : vector<8x128xf32>
    %9 = math.tanh %8 : vector<8x128xf32>
    %c0_4 = arith.constant 0 : index
    %c0_5 = arith.constant 0 : index
    %10 = vector.load %arg4[%c0_4, %c0_5] : memref<8x128xf32, #tpu.memory_space<vmem>>, vector<8x128xf32>
    tpu.vector_store %arg4[%c0_4, %c0_5], %9 {strides = array<i32>} : memref<8x128xf32, #tpu.memory_space<vmem>>, vector<8x128xf32>,
    return
  }
  func.func @transform_0(%arg0: i32) -> (i32, i32) {
    %c0_i32 = arith.constant 0 : i32
    %c0_i32_0 = arith.constant 0 : i32
    %c0_i32_1 = arith.constant 0 : i32
    return %c0_i32, %c0_i32_0 : i32, i32
  }
  func.func @transform_1(%arg0: i32) -> (i32, i32) {
    %c0_i32 = arith.constant 0 : i32
    %c0_i32_0 = arith.constant 0 : i32
    return %arg0, %c0_i32 : i32, i32
  }
  func.func @transform_2(%arg0: i32) -> (i32, i32) {
    %c0_i32 = arith.constant 0 : i32
    %c0_i32_0 = arith.constant 0 : i32
    %c0_i32_1 = arith.constant 0 : i32
    return %c0_i32, %c0_i32_0 : i32, i32
  }
  func.func @transform_3(%arg0: i32) -> (i32, i32) {
    %c0_i32 = arith.constant 0 : i32
    %c0_i32_0 = arith.constant 0 : i32
    return %c0_i32, %arg0 : i32, i32
  }
}

</mosaic_0001>

<bundles_post_ra>
// kernel: tpu_custom_call.1
= control target key start
LH: loop header
LB: loop body
LE: loop exit
PB: predicated region body
PF: predicated region fallthrough
CT: control target
= control target key end

     0   :  { %vm43_vm0 = vcmask 261120   ;;  %v314_v2 = vmov 0.0|0.0   ;;  %vm315_vm2 = vmmov 0   ;;  %v316_v5 = vmov 0.0   ;;  %s427_s0 = inlined_call_operand.vmem [shape: f32[8,32], index: 0, kind: input, shape index: {}]   ;;  %s428_s1 = inlined_call_operand.vmem [shape: f32[128,32], index: 1, kind: input, shape index: {}]   ;;  %s429_s2 = inlined_call_operand.vmem [shape: f32[1,128], index: 2, kind: input, shape index: {}]   ;;  %s430_s3 = inlined_call_operand.hbm [shape: f32[8,128], index: 3, kind: output, shape index: {}]  }
   0x1   :  { %v16_v0 = vld [vmem:[%s428_s1] sm:$0xff]  ;;  %v17_v1 = vld [vmem:[%s428_s1 + $0x8] sm:$0xff]  ;;  %252 = vmatprep.subr.bf16.mxu0 %v314_v2  ;;  %vm346_vm1 = vmpackc.low %vm43_vm0, %vm43_vm0  ;;  %249 = vmatprep.mubr.msk.f32.mxu0 %vm315_vm2, %v316_v5 }
   0x2   :  { %v253_v3 = vpack.c.bf16 %v17_v1, %v16_v0  ;;  %v18_v6 = vld [vmem:[%s428_s1 + $0x10] sm:$0xff]  ;;  %v19_v7 = vld [vmem:[%s428_s1 + $0x18] sm:$0xff] }
   0x4   :  { %255 = vmatpush3.bf16.xpose.msk.msra.mxu0 %vm346_vm1, %v253_v3 }
   0x5   :  { %256 = vmatprep.subr.bf16.mxu0 %v314_v2 }
   0x6   :  { %8 = vsyncpa [#allocation3], 0  ;;  %v257_v8 = vpack.c.bf16 %v19_v7, %v18_v6  ;;  %v20_v9 = vld [vmem:[%s428_s1 + $0x20] sm:$0xff]  ;;  %v21_v10 = vld [vmem:[%s428_s1 + $0x28] sm:$0xff]  ;;  %s317_s21 = smov [#allocation2]  }
   0x7   :  { %v261_v11 = vpack.c.bf16 %v21_v10, %v20_v9  ;;  %v22_v12 = vld [vmem:[%s428_s1 + $0x30] sm:$0xff]  ;;  %v23_v13 = vld [vmem:[%s428_s1 + $0x38] sm:$0xff]  ;;  %v24_v15 = vld [vmem:[%s428_s1 + $0x40] sm:$0xff] }
   0x8   :  { %v265_v14 = vpack.c.bf16 %v23_v13, %v22_v12  ;;  %v25_v16 = vld [vmem:[%s428_s1 + $0x48] sm:$0xff]  ;;  %v26_v18 = vld [vmem:[%s428_s1 + $0x50] sm:$0xff]  ;;  %v27_v19 = vld [vmem:[%s428_s1 + $0x58] sm:$0xff] }
   0x9   :  { %v269_v17 = vpack.c.bf16 %v25_v16, %v24_v15  ;;  %v273_v20 = vpack.c.bf16 %v27_v19, %v26_v18  ;;  %v28_v21 = vld [vmem:[%s428_s1 + $0x60] sm:$0xff]  ;;  %v29_v22 = vld [vmem:[%s428_s1 + $0x68] sm:$0xff]  ;;  %v30_v24 = vld [vmem:[%s428_s1 + $0x70] sm:$0xff] }
   0xa   :  { %v277_v23 = vpack.c.bf16 %v29_v22, %v28_v21  ;;  %v31_v25 = vld [vmem:[%s428_s1 + $0x78] sm:$0xff]  ;;  %v15_v27 = vld [vmem:[%s427_s0] sm:$0xff]  ;;  %s173_s1 = sshll.u32 %s317_s21, 4  ;;  %s174_s1 = int_to_ptr.vmem [resolvable:$true] %s173_s1 }
   0xb   :  { %v281_v26 = vpack.c.bf16 %v31_v25, %v30_v24  ;;  %v182_v28 = vld [vmem:[%s429_s2] ss:$0 sm:$0xff]  ;;  %s290_s22 = scalar_lea.vmem %s174_s1, 128  ;;  %p295_p1 = scmp.lt.s32.totalorder %s174_s1, %s174_s1 }
   0xc   :  { %259 = vmatpush3.bf16.xpose.msk.msra.mxu0 %vm346_vm1, %v257_v8  ;;  %p291_p0 = scmp.ne.s32.totalorder %s174_s1, %s290_s22  ;;  %p296_p2 = scmp.lt.s32.totalorder %s290_s22, %s290_s22 }
   0xd   :  { %260 = vmatprep.subr.bf16.mxu0 %v314_v2 }
   0xe   :  { %p297_p3 = por %p296_p2, %p295_p1 }
  0x10   :  { %p298_p4 = pnand %p297_p3, %p291_p0 }
  0x14   :  { %263 = vmatpush3.bf16.xpose.msk.msra.mxu0 %vm346_vm1, %v261_v11 }
  0x15   :  { %264 = vmatprep.subr.bf16.mxu0 %v314_v2 }
  0x1c   :  { %267 = vmatpush3.bf16.xpose.msk.msra.mxu0 %vm346_vm1, %v265_v14 }
  0x1d   :  { %268 = vmatprep.subr.bf16.mxu0 %v314_v2 }
  0x24   :  { %271 = vmatpush3.bf16.xpose.msk.msra.mxu0 %vm346_vm1, %v269_v17 }
  0x25   :  { %272 = vmatprep.subr.bf16.mxu0 %v314_v2 }
  0x2c   :  { %275 = vmatpush3.bf16.xpose.msk.msra.mxu0 %vm346_vm1, %v273_v20 }
  0x2d   :  { %276 = vmatprep.subr.bf16.mxu0 %v314_v2 }
  0x34   :  { %279 = vmatpush3.bf16.xpose.msk.msra.mxu0 %vm346_vm1, %v277_v23 }
  0x35   :  { %280 = vmatprep.subr.bf16.mxu0 %v314_v2 }
  0x3c   :  { %283 = vmatpush3.bf16.xpose.msk.msra.mxu0 %vm346_vm1, %v281_v26 }
  0x43   :  { %250 = vmatmul.mubr.msk.f32.vlgmr.msra.gmra.mrb[0].mxu0 %vm43_vm0, %v15_v27 }
 0x116   :  { %v161_v29 = vpop.f32.mrb[0].mxu0 }
 0x117   :  { %v162_v30 = vadd.f32 %v182_v28, %v161_v29  ;;  %v251_v31 = vpop.f32.mrb[1].mxu0 }
 0x119   :  { %288 = vtanh.f32 %v162_v30 }
 0x123   :  { %v289_v32 = vpop.eup %288 }
 0x124   :  { %166 = vst [vmem:[#allocation2] sm:$0xff] %v289_v32 }
 0x125   :  { %301 = shalt.err (!%p298_p4)
}
 0x126   :  { %s302_s2 = scalar_lea.hbm %s430_s3, 128 }
 0x127   :  { %p303_p5 = scmp.ne.s32.totalorder %s430_s3, %s302_s2  ;;  %p306_p6 = scmp.lt.u32.totalorder %s302_s2, %s430_s3 }
 0x129   :  { %p308_p7 = pnand %p306_p6, %p303_p5 }
 0x12b   :  { %311 = shalt.err (!%p308_p7)
}
 0x12c   :  { %176 = dma.vmem_to_hbm [thread:$0]  %s174_s1, 128, %s430_s3, [#allocation3]  }
 0x12d   :  { %312 = dma.done.wait [#allocation3], 128  }
 0x12e   :  { %313 = vsyncadd [#allocation3], 4294967168 }
 0x12f   :  { %180 = vsyncpa [#allocation3], 1 }

</bundles_post_ra>
